<compile_context>
chip_gen: v7x
topology: tpu7x:2x2x1
jax: 0.10.0
libtpu: 0.0.40
codegen_flags: <defaults>
</compile_context>

<pallas_src>
import numpy as np
import jax
import jax.numpy as jnp
from jax.experimental import pallas as pl
from jax.experimental.pallas import tpu as pltpu

EPS = 1e-5
SLOPE = 0.2      # LeakyReLU negative slope
LANE = 128       # pad output channels to lane width
SUB = 16         # row-tile multiple (bf16 sublane tile) -> layout-free in-kernel reshapes


def _round_up(x, m):
    return (x + m - 1) // m * m


# ------------------------------- Pallas kernels -------------------------------

def _matmul_stats_kernel(p_ref, w_ref, z_ref, stats_ref):
    """One row tile: z = patches @ W (MXU, f32 acc); emit bf16 z + per-tile (sum, sumsq)."""
    z = jnp.dot(p_ref[...], w_ref[...], preferred_element_type=jnp.float32)
    z_ref[...] = z.astype(z_ref.dtype)
    s = jnp.sum(z, axis=0, keepdims=True)
    sq = jnp.sum(z * z, axis=0, keepdims=True)
    stats_ref[...] = jnp.concatenate([s, sq], axis=0).reshape(stats_ref.shape)


def _norm_lrelu_kernel(z_ref, ss_ref, o_ref):
    """y = z*scale + shift; LeakyReLU(0.2) as max(y, 0.2*y)."""
    y = z_ref[...].astype(jnp.float32) * ss_ref[0:1, :] + ss_ref[1:2, :]
    o_ref[...] = jnp.maximum(y, SLOPE * y).astype(o_ref.dtype)


def _norm_lrelu_pool_kernel(z_ref, ss_ref, o_ref):
    """z_ref holds the 4 pooling parity groups (4, TM, C); 2x2 max-pool = leading-axis max."""
    G, TM, C = z_ref.shape
    y = z_ref[...].astype(jnp.float32).reshape(G * TM, C) * ss_ref[0:1, :] + ss_ref[1:2, :]
    y = jnp.maximum(y, SLOPE * y)
    o_ref[...] = jnp.max(y.reshape(G, TM, C), axis=0).astype(o_ref.dtype)


# ------------------------------ pallas_call wrappers ------------------------------

def _vmem_limit(single_buffer_bytes):
    # double-buffered blocks * 2x headroom; clamp to a range safe on v5e/v6e/v7x
    return int(min(max(4 * single_buffer_bytes, 16 << 20), 48 << 20))


def _matmul_stats(p2d, w_p, *, tm):
    R, F = p2d.shape
    cpad = w_p.shape[1]
    n_tiles = R // tm
    blk = tm * F * 2 + F * cpad * 2 + tm * cpad * 2 + 2 * cpad * 4
    cost = pl.CostEstimate(
        flops=2 * R * F * cpad, transcendentals=0,
        bytes_accessed=R * F * 2 + F * cpad * 2 + R * cpad * 2 + n_tiles * 2 * cpad * 4)
    return pl.pallas_call(
        _matmul_stats_kernel,
        out_shape=(jax.ShapeDtypeStruct((R, cpad), jnp.bfloat16),
                   jax.ShapeDtypeStruct((n_tiles, 2, cpad), jnp.float32)),
        grid=(n_tiles,),
        in_specs=[pl.BlockSpec((tm, F), lambda i: (i, 0)),
                  pl.BlockSpec((F, cpad), lambda i: (0, 0))],      # weights VMEM-resident
        out_specs=(pl.BlockSpec((tm, cpad), lambda i: (i, 0)),
                   pl.BlockSpec((1, 2, cpad), lambda i: (i, 0, 0))),
        compiler_params=pltpu.CompilerParams(
            dimension_semantics=("parallel",), vmem_limit_bytes=_vmem_limit(blk)),
        cost_estimate=cost,
    )(p2d, w_p)


def _norm_lrelu(z, ss, *, tm, out_dtype):
    R, cpad = z.shape
    n_tiles = R // tm
    osz = jnp.dtype(out_dtype).itemsize
    blk = tm * cpad * 2 + 2 * cpad * 4 + tm * cpad * osz
    cost = pl.CostEstimate(flops=4 * R * cpad, transcendentals=0,
                           bytes_accessed=R * cpad * 2 + 2 * cpad * 4 + R * cpad * osz)
    return pl.pallas_call(
        _norm_lrelu_kernel,
        out_shape=jax.ShapeDtypeStruct((R, cpad), out_dtype),
        grid=(n_tiles,),
        in_specs=[pl.BlockSpec((tm, cpad), lambda i: (i, 0)),
                  pl.BlockSpec((2, cpad), lambda i: (0, 0))],
        out_specs=pl.BlockSpec((tm, cpad), lambda i: (i, 0)),
        compiler_params=pltpu.CompilerParams(
            dimension_semantics=("parallel",), vmem_limit_bytes=_vmem_limit(blk)),
        cost_estimate=cost,
    )(z, ss)


def _norm_lrelu_pool(z4, ss, *, tm, out_dtype):
    G, R, cpad = z4.shape
    n_tiles = R // tm
    osz = jnp.dtype(out_dtype).itemsize
    blk = G * tm * cpad * 2 + 2 * cpad * 4 + tm * cpad * osz
    cost = pl.CostEstimate(flops=5 * G * R * cpad, transcendentals=0,
                           bytes_accessed=G * R * cpad * 2 + 2 * cpad * 4 + R * cpad * osz)
    return pl.pallas_call(
        _norm_lrelu_pool_kernel,
        out_shape=jax.ShapeDtypeStruct((R, cpad), out_dtype),
        grid=(n_tiles,),
        in_specs=[pl.BlockSpec((G, tm, cpad), lambda i: (0, i, 0)),
                  pl.BlockSpec((2, cpad), lambda i: (0, 0))],
        out_specs=pl.BlockSpec((tm, cpad), lambda i: (i, 0)),
        compiler_params=pltpu.CompilerParams(
            dimension_semantics=("parallel",), vmem_limit_bytes=_vmem_limit(blk)),
        cost_estimate=cost,
    )(z4, ss)


# ------------------------------- layer helpers -------------------------------

def _pad_last(v, cpad):
    c = v.shape[-1]
    return v if c == cpad else jnp.pad(v, [(0, 0)] * (v.ndim - 1) + [(0, cpad - c)])


def _prep_params(w, g, beta):
    F, C = w.shape
    cpad = _round_up(C, LANE)
    w_p = _pad_last(w, cpad).astype(jnp.bfloat16)
    g_p = _pad_last(g.reshape(1, C).astype(jnp.float32), cpad)
    beta_p = _pad_last(beta.reshape(1, C).astype(jnp.float32), cpad)
    return w_p, g_p, beta_p, cpad


def _fold_bn(stats, count, g_p, beta_p):
    """Reduce per-tile partial sums and fold BN into per-channel scale/shift (tiny, plain JAX)."""
    tot = jnp.sum(stats, axis=0)                       # (2, cpad)
    mean = tot[0:1] / count
    var = jnp.maximum(tot[1:2] / count - mean * mean, 0.0)
    scale = g_p * jax.lax.rsqrt(var + EPS)
    shift = beta_p - mean * scale
    return jnp.concatenate([scale, shift], axis=0)     # (2, cpad) f32


def _conv_bn_lrelu(patches, w, g, beta, *, block_rows, out_dtype):
    R, F = patches.shape
    C = w.shape[1]
    w_p, g_p, beta_p, _ = _prep_params(w, g, beta)
    tm = min(_round_up(block_rows, SUB), _round_up(R, SUB))
    rpad = _round_up(R, tm)
    p = patches.astype(jnp.bfloat16)
    if rpad != R:
        p = jnp.pad(p, ((0, rpad - R), (0, 0)))        # zero rows contribute 0 to BN sums
    z, stats = _matmul_stats(p, w_p, tm=tm)
    ss = _fold_bn(stats, float(R), g_p, beta_p)
    out = _norm_lrelu(z, ss, tm=tm, out_dtype=out_dtype)
    return out[:R, :C]


def _conv_bn_lrelu_pool(pg, w, g, beta, *, block_rows, out_dtype):
    G, Rp, F = pg.shape                                # G = 4 pooling parity groups
    C = w.shape[1]
    w_p, g_p, beta_p, cpad = _prep_params(w, g, beta)
    tm = min(_round_up(block_rows, SUB), _round_up(Rp, SUB))
    rp_pad = _round_up(Rp, tm)
    p = pg.astype(jnp.bfloat16)
    if rp_pad != Rp:
        p = jnp.pad(p, ((0, 0), (0, rp_pad - Rp), (0, 0)))
    p2d = p.reshape(G * rp_pad, F)                     # group-major layout: reshape is metadata-only
    z2d, stats = _matmul_stats(p2d, w_p, tm=tm)
    ss = _fold_bn(stats, float(G * Rp), g_p, beta_p)   # BN stats over the full pre-pool map
    z4 = z2d.reshape(G, rp_pad, cpad)                  # free view of the group-major z
    out = _norm_lrelu_pool(z4, ss, tm=tm, out_dtype=out_dtype)
    return out[:Rp, :C]


# ------------------------------- plain-JAX glue -------------------------------

def _im2col(x_nhwc, K, pad):
    N, H, W, C = x_nhwc.shape
    xp = jnp.pad(x_nhwc, ((0, 0), (pad, pad), (pad, pad), (0, 0)))
    Ho = H + 2 * pad - K + 1
    Wo = W + 2 * pad - K + 1
    cols = [xp[:, ky:ky + Ho, kx:kx + Wo, :] for ky in range(K) for kx in range(K)]
    return jnp.concatenate(cols, axis=-1), Ho, Wo      # (N, Ho, Wo, K*K*C)


def transfer_conv_m_forward(x_nchw, params, *, resnet=False, block_rows=1024):
    # NOTE: conv biases b1/b2 are intentionally NOT applied in the kernels — a bias added
    # before training-mode BatchNorm cancels exactly (mean shifts by b, variance unchanged).
    K = 1 if resnet else 3
    pad = 0 if resnet else 1
    x = jnp.transpose(x_nchw, (0, 2, 3, 1)).astype(jnp.float32)  # NHWC
    N = x.shape[0]

    # ---- layer1: Conv(K) -> BN -> LeakyReLU(0.2) ----
    w1 = params["w1"]
    c_mid = w1.shape[-1]
    pat1, H1, W1 = _im2col(x, K, pad)
    F1 = pat1.shape[-1]
    h1 = _conv_bn_lrelu(pat1.reshape(N * H1 * W1, F1), w1.reshape(F1, c_mid),
                        params["g1"], params["beta1"],
                        block_rows=block_rows, out_dtype=jnp.bfloat16)
    h1 = h1.reshape(N, H1, W1, c_mid)

    # ---- layer2: Conv(K) -> BN -> LeakyReLU(0.2) -> MaxPool2d(2) ----
    w2 = params["w2"]
    c_out = w2.shape[-1]
    pat2, H2, W2 = _im2col(h1, K, pad)
    F2 = pat2.shape[-1]
    Hp, Wp = H2 // 2, W2 // 2
    groups = [pat2[:, dy::2, dx::2, :].reshape(N * Hp * Wp, F2)
              for dy in range(2) for dx in range(2)]
    pg = jnp.stack(groups, axis=0)                      # (4, R_pool, F2)
    out = _conv_bn_lrelu_pool(pg, w2.reshape(F2, c_out),
                              params["g2"], params["beta2"],
                              block_rows=block_rows, out_dtype=jnp.float32)
    out = out.reshape(N, Hp, Wp, c_out)
    return jnp.transpose(out, (0, 3, 1, 2))             # back to NCHW


# --------------------------- deterministic parameters ---------------------------

def init_params(key, in_c, *, resnet=False):
    K = 1 if resnet else 3
    c1_in = in_c // 2 if resnet else in_c
    c1_out = in_c // 2
    c2_out = in_c
    ks = jax.random.split(key, 8)

    def conv_w(k, shape):  # weight stored HWIO: (K, K, Cin, Cout)
        fan_in = shape[0] * shape[1] * shape[2]
        return jax.random.normal(k, shape, jnp.float32) / np.sqrt(fan_in)

    return dict(
        w1=conv_w(ks[0], (K, K, c1_in, c1_out)),
        b1=0.1 * jax.random.normal(ks[1], (c1_out,), jnp.float32),
        g1=1.0 + 0.1 * jax.random.normal(ks[2], (c1_out,), jnp.float32),
        beta1=0.1 * jax.random.normal(ks[3], (c1_out,), jnp.float32),
        w2=conv_w(ks[4], (K, K, c1_out, c2_out)),
        b2=0.1 * jax.random.normal(ks[5], (c2_out,), jnp.float32),
        g2=1.0 + 0.1 * jax.random.normal(ks[6], (c2_out,), jnp.float32),
        beta2=0.1 * jax.random.normal(ks[7], (c2_out,), jnp.float32),
    )


# ------------------------------- pure-JAX reference -------------------------------

def _reference(x_nchw, params, *, resnet=False):
    # Reference DOES apply the conv bias (like the PyTorch module) — it cancels through BN.
    pad = 0 if resnet else 1
    x = jnp.transpose(x_nchw, (0, 2, 3, 1)).astype(jnp.float32)

    def block(x, w, b, g, beta):
        y = jax.lax.conv_general_dilated(
            x, w, (1, 1), [(pad, pad), (pad, pad)],
            dimension_numbers=("NHWC", "HWIO", "NHWC"),
            precision=jax.lax.Precision.HIGHEST) + b
        m = jnp.mean(y, axis=(0, 1, 2), keepdims=True)
        v = jnp.mean((y - m) ** 2, axis=(0, 1, 2), keepdims=True)
        y = (y - m) * jax.lax.rsqrt(v + EPS) * g + beta
        return jnp.where(y >= 0, y, SLOPE * y)

    h = block(x, params["w1"], params["b1"], params["g1"], params["beta1"])
    h = block(h, params["w2"], params["b2"], params["g2"], params["beta2"])
    N, H, W, C = h.shape
    h = h.reshape(N, H // 2, 2, W // 2, 2, C).max(axis=(2, 4))
    return jnp.transpose(h, (0, 3, 1, 2))


if __name__ == "__main__":
    N, in_c, H, W = 2, 4, 16, 16
    key = jax.random.PRNGKey(0)
    kx, kp = jax.random.split(key)
    x = jax.random.normal(kx, (N, in_c, H, W), jnp.float32)
    params = init_params(kp, in_c, resnet=False)

    ref = np.asarray(_reference(x, params, resnet=False))

    # exercise single-tile, multi-tile, and multi-tile + row-padding code paths
    for block_rows in (1024, 64, 96):
        out = transfer_conv_m_forward(x, params, resnet=False, block_rows=block_rows)
        out = jax.block_until_ready(out)
        assert out.shape == (N, in_c, H // 2, W // 2), out.shape
        if not np.allclose(np.asarray(out), ref, rtol=5e-2, atol=5e-2):
            raise AssertionError(
                f"Pallas output does not match JAX reference (block_rows={block_rows})")
    print("KERNEL_OK")
</pallas_src>

<mosaic_0001>
module attributes {stable_mosaic.version = 11 : i64} {
  func.func @_matmul_stats_kernel(%arg0: i32, %arg1: memref<512x36xbf16, #tpu.memory_space<vmem>>, %arg2: memref<36x128xbf16, #tpu.memory_space<vmem>>, %arg3: memref<512x128xbf16, #tpu.memory_space<vmem>>, %arg4: memref<1x2x128xf32, #tpu.memory_space<vmem>>) attributes {dimension_semantics = [#tpu.dimension_semantics<parallel>], iteration_bounds = array<i64: 1>, scalar_prefetch = 0 : i64, scratch_operands = 0 : i64, tpu.core_type = #tpu.core_type<tc>, window_params = [{transform_indices = @transform_0, window_bounds = array<i64: 512, 36>}, {pipeline_mode = #tpu.pipeline_mode<synchronous>, transform_indices = @transform_1, window_bounds = array<i64: 36, 128>}, {transform_indices = @transform_2, window_bounds = array<i64: 512, 128>}, {transform_indices = @transform_3, window_bounds = array<i64: 1, 2, 128>}]} {
    %c0 = arith.constant 0 : index
    %c0_0 = arith.constant 0 : index
    %0 = vector.load %arg1[%c0, %c0_0] : memref<512x36xbf16, #tpu.memory_space<vmem>>, vector<512x36xbf16>
    %c0_1 = arith.constant 0 : index
    %c0_2 = arith.constant 0 : index
    %1 = vector.load %arg2[%c0_1, %c0_2] : memref<36x128xbf16, #tpu.memory_space<vmem>>, vector<36x128xbf16>
    %cst = arith.constant dense<0.000000e+00> : vector<512x128xf32>
    %2 = tpu.matmul %0, %1, %cst {dimension_numbers = #tpu.dot_dimension_numbers<[1], [0], [0], [1], [0, 0, 1, 1], [], []>} : vector<512x36xbf16>, vector<36x128xbf16>, vector<512x128xf32> -> vector<512x128xf32>
    %3 = arith.truncf %2 : vector<512x128xf32> to vector<512x128xbf16>
    %c0_3 = arith.constant 0 : index
    %c0_4 = arith.constant 0 : index
    %4 = vector.load %arg3[%c0_3, %c0_4] : memref<512x128xbf16, #tpu.memory_space<vmem>>, vector<512x128xbf16>
    tpu.vector_store %arg3[%c0_3, %c0_4], %3 {strides = array<i32>} : memref<512x128xbf16, #tpu.memory_space<vmem>>, vector<512x128xbf16>,
    %cst_5 = arith.constant dense<0.000000e+00> : vector<128xf32>
    %5 = vector.multi_reduction <add>, %2, %cst_5 [0] : vector<512x128xf32> to vector<128xf32>
    %6 = vector.shape_cast %5 : vector<128xf32> to vector<1x128xf32>
    %7 = arith.mulf %2, %2 : vector<512x128xf32>
    %cst_6 = arith.constant dense<0.000000e+00> : vector<128xf32>
    %8 = vector.multi_reduction <add>, %7, %cst_6 [0] : vector<512x128xf32> to vector<128xf32>
    %9 = vector.shape_cast %8 : vector<128xf32> to vector<1x128xf32>
    %10 = tpu.concatenate %6, %9 in 0 : vector<1x128xf32>, vector<1x128xf32> -> vector<2x128xf32>
    %11 = vector.shape_cast %10 : vector<2x128xf32> to vector<1x2x128xf32>
    %c0_7 = arith.constant 0 : index
    %c0_8 = arith.constant 0 : index
    %c0_9 = arith.constant 0 : index
    %12 = vector.load %arg4[%c0_7, %c0_8, %c0_9] : memref<1x2x128xf32, #tpu.memory_space<vmem>>, vector<1x2x128xf32>
    tpu.vector_store %arg4[%c0_7, %c0_8, %c0_9], %11 {strides = array<i32>} : memref<1x2x128xf32, #tpu.memory_space<vmem>>, vector<1x2x128xf32>,
    return
  }
  func.func @transform_0(%arg0: i32) -> (i32, i32) {
    %c0_i32 = arith.constant 0 : i32
    %c0_i32_0 = arith.constant 0 : i32
    return %arg0, %c0_i32 : i32, i32
  }
  func.func @transform_1(%arg0: i32) -> (i32, i32) {
    %c0_i32 = arith.constant 0 : i32
    %c0_i32_0 = arith.constant 0 : i32
    %c0_i32_1 = arith.constant 0 : i32
    return %c0_i32, %c0_i32_0 : i32, i32
  }
  func.func @transform_2(%arg0: i32) -> (i32, i32) {
    %c0_i32 = arith.constant 0 : i32
    %c0_i32_0 = arith.constant 0 : i32
    return %arg0, %c0_i32 : i32, i32
  }
  func.func @transform_3(%arg0: i32) -> (i32, i32, i32) {
    %c0_i32 = arith.constant 0 : i32
    %c0_i32_0 = arith.constant 0 : i32
    %c0_i32_1 = arith.constant 0 : i32
    return %arg0, %c0_i32, %c0_i32_0 : i32, i32, i32
  }
}

</mosaic_0001>

<bundles_post_ra>
// kernel: tpu_custom_call.1
= control target key start
LH: loop header
LB: loop body
LE: loop exit
PB: predicated region body
PF: predicated region fallthrough
CT: control target
= control target key end

     0   :  { %9 = vsyncpa [#allocation3], 0  ;;  %vm260_vm0 = vcmask 293888   ;;  %vm357_vm1 = vcmask 1041408   ;;  %s2168_s0 = inlined_call_operand.vmem [shape: bf16[512,36], index: 0, kind: input, shape index: {}]   ;;  %s2169_s1 = inlined_call_operand.vmem [shape: bf16[36,128], index: 1, kind: input, shape index: {}]   ;;  %s2170_s2 = inlined_call_operand.hbm [shape: bf16[512,128], index: 2, kind: output, shape index: {0}]   ;;  %s2171_s3 = inlined_call_operand.hbm [shape: f32[1,2,128], index: 3, kind: output, shape index: {1}]  }
   0x1   :  { %v1708_v0 = vld [vmem:[%s2169_s1] sm:$0xff]   ;;  %v1709_v1 = vld [vmem:[%s2169_s1 + $0x8] sm:$0xff]   ;;  %v1710_v2 = vld [vmem:[%s2169_s1 + $0x10] ss:$0 sps:$4 sm:$0x33]  }
   0x2   :  { %1626 = vmatprep.subr.bf16.mxu0 %v1708_v0  ;;  %v1711_v3 = vld [vmem:[%s2168_s0] sm:$0xff]   ;;  %1696 = vmatprep.subr.bf16.mxu1 %v1708_v0  ;;  %v359_v4 = vsel %vm357_vm1, %v1710_v2, 0  ;;  %v1712_v5 = vld [vmem:[%s2168_s0 + $0x8] sm:$0xff]   ;;  %v1713_v6 = vld [vmem:[%s2168_s0 + $0x10] sm:$0xff]  }
   0x3   :  { %1627 = vmatpush3.bf16.msra.mxu0 %v1708_v0  ;;  %1699 = vmatpush3.bf16.msra.mxu1 %v1708_v0  ;;  %v1714_v7 = vld [vmem:[%s2168_s0 + $0x18] sm:$0xff]   ;;  %v1715_v8 = vld [vmem:[%s2168_s0 + $0x20] sm:$0xff]   ;;  %v1728_v10 = vld [vmem:[%s2168_s0 + $0x88] sm:$0xff]  }
   0x4   :  { %1628 = vmatprep.subr.bf16.mxu0 %v1709_v1  ;;  %1632 = vmatprep.mubr.msk.bf16.mxu0 %vm260_vm0, %v1711_v3  ;;  %v1727_v9 = vld [vmem:[%s2168_s0 + $0x80] sm:$0xff]   ;;  %v1729_v11 = vld [vmem:[%s2168_s0 + $0x90] sm:$0xff]   ;;  %v1716_v12 = vld [vmem:[%s2168_s0 + $0x28] sm:$0xff]  }
   0x5   :  { %1697 = vmatprep.subr.bf16.mxu1 %v1709_v1  ;;  %1664 = vmatprep.mubr.msk.bf16.mxu1 %vm260_vm0, %v1727_v9  ;;  %v1717_v13 = vld [vmem:[%s2168_s0 + $0x30] sm:$0xff]   ;;  %v1730_v14 = vld [vmem:[%s2168_s0 + $0x98] sm:$0xff]   ;;  %v1731_v15 = vld [vmem:[%s2168_s0 + $0xa0] sm:$0xff]  }
   0x6   :  { %v1718_v16 = vld [vmem:[%s2168_s0 + $0x38] sm:$0xff]   ;;  %v1732_v17 = vld [vmem:[%s2168_s0 + $0xa8] sm:$0xff]  }
   0x7   :  { %1629 = vmatpush3.bf16.msra.mxu0 %v1709_v1  ;;  %1700 = vmatpush3.bf16.msra.mxu1 %v1709_v1 }
   0x8   :  { %1702 = vmatprep.subr.msk.bf16.mxu0 %vm357_vm1, %v1710_v2  ;;  %1703 = vmatprep.subr.msk.bf16.mxu1 %vm357_vm1, %v1710_v2 }
   0xb   :  { %1631 = vmatpush3.bf16.msra.mxu0 %v359_v4  ;;  %1701 = vmatpush3.bf16.msra.mxu1 %v359_v4 }
   0xe   :  { %1633 = vmatmul.mubr.msk.bf16.vlgmr.msra.gmra.mrb[0].mxu0 %vm260_vm0, %v1712_v5  ;;  %1665 = vmatmul.mubr.msk.bf16.vlgmr.msra.gmra.mrb[0].mxu1 %vm260_vm0, %v1728_v10 }
   0xf   :  { %1636 = vmatprep.mubr.msk.bf16.mxu0 %vm260_vm0, %v1713_v6  ;;  %1668 = vmatprep.mubr.msk.bf16.mxu1 %vm260_vm0, %v1729_v11 }
  0x16   :  { %1637 = vmatmul.mubr.msk.bf16.gmra.mrb[4].mxu0 %vm260_vm0, %v1714_v7  ;;  %1669 = vmatmul.mubr.msk.bf16.gmra.mrb[4].mxu1 %vm260_vm0, %v1730_v14 }
  0x17   :  { %1640 = vmatprep.mubr.msk.bf16.mxu0 %vm260_vm0, %v1715_v8  ;;  %1672 = vmatprep.mubr.msk.bf16.mxu1 %vm260_vm0, %v1731_v15 }
  0x1e   :  { %1641 = vmatmul.mubr.msk.bf16.gmra.mrb[8].mxu0 %vm260_vm0, %v1716_v12 }
  0x1f   :  { %1644 = vmatprep.mubr.msk.bf16.mxu0 %vm260_vm0, %v1717_v13 }
  0x20   :  { %10 = vsyncpa [#allocation5], 0  ;;  %v1719_v18 = vld [vmem:[%s2168_s0 + $0x40] sm:$0xff]   ;;  %v1733_v19 = vld [vmem:[%s2168_s0 + $0xb0] sm:$0xff]   ;;  %1673 = vmatmul.mubr.msk.bf16.gmra.mrb[8].mxu1 %vm260_vm0, %v1732_v17 }
  0x21   :  { %1676 = vmatprep.mubr.msk.bf16.mxu1 %vm260_vm0, %v1733_v19  ;;  %v1720_v20 = vld [vmem:[%s2168_s0 + $0x48] sm:$0xff]   ;;  %v1734_v21 = vld [vmem:[%s2168_s0 + $0xb8] sm:$0xff]   ;;  %v1721_v22 = vld [vmem:[%s2168_s0 + $0x50] sm:$0xff]  }
  0x22   :  { %v1735_v23 = vld [vmem:[%s2168_s0 + $0xc0] sm:$0xff]   ;;  %v1722_v24 = vld [vmem:[%s2168_s0 + $0x58] sm:$0xff]   ;;  %v1736_v25 = vld [vmem:[%s2168_s0 + $0xc8] sm:$0xff]  }
  0x23   :  { %v1723_v26 = vld [vmem:[%s2168_s0 + $0x60] sm:$0xff]   ;;  %v1737_v27 = vld [vmem:[%s2168_s0 + $0xd0] sm:$0xff]   ;;  %v1724_v28 = vld [vmem:[%s2168_s0 + $0x68] sm:$0xff]  }
  0x24   :  { %v1738_v29 = vld [vmem:[%s2168_s0 + $0xd8] sm:$0xff]   ;;  %v1725_v30 = vld [vmem:[%s2168_s0 + $0x70] sm:$0xff]   ;;  %v1739_v31 = vld [vmem:[%s2168_s0 + $0xe0] sm:$0xff]  }
  0x25   :  { %v1726_v32 = vld [vmem:[%s2168_s0 + $0x78] sm:$0xff]   ;;  %v1740_v33 = vld [vmem:[%s2168_s0 + $0xe8] sm:$0xff]   ;;  %v1741_v34 = vld [vmem:[%s2168_s0 + $0xf0] sm:$0xff]  }
  0x26   :  { %1645 = vmatmul.mubr.msk.bf16.gmra.mrb[12].mxu0 %vm260_vm0, %v1718_v16  ;;  %v1742_v35 = vld [vmem:[%s2168_s0 + $0xf8] sm:$0xff]   ;;  %s1791_s0 = smov [#allocation2]  }
  0x27   :  { %1648 = vmatprep.mubr.msk.bf16.mxu0 %vm260_vm0, %v1719_v18  ;;  %s1180_s25 = sshll.u32 %s1791_s0, 4  ;;  %s1181_s25 = int_to_ptr.vmem [resolvable:$true] %s1180_s25 }
  0x28   :  { %1677 = vmatmul.mubr.msk.bf16.gmra.mrb[12].mxu1 %vm260_vm0, %v1734_v21  ;;  %s1743_s26 = scalar_lea.vmem %s1181_s25, 4096  ;;  %p1748_p1 = scmp.lt.s32.totalorder %s1181_s25, %s1181_s25 }
  0x29   :  { %1680 = vmatprep.mubr.msk.bf16.mxu1 %vm260_vm0, %v1735_v23  ;;  %p1744_p0 = scmp.ne.s32.totalorder %s1181_s25, %s1743_s26  ;;  %p1749_p2 = scmp.lt.s32.totalorder %s1743_s26, %s1743_s26 }
  0x2b   :  { %p1750_p3 = por %p1749_p2, %p1748_p1 }
  0x2d   :  { %p1751_p4 = pnand %p1750_p3, %p1744_p0 }
  0x2e   :  { %1649 = vmatmul.mubr.msk.bf16.gmra.mrb[16].mxu0 %vm260_vm0, %v1720_v20 }
  0x2f   :  { %1652 = vmatprep.mubr.msk.bf16.mxu0 %vm260_vm0, %v1721_v22 }
  0x30   :  { %1681 = vmatmul.mubr.msk.bf16.gmra.mrb[16].mxu1 %vm260_vm0, %v1736_v25 }
  0x31   :  { %1684 = vmatprep.mubr.msk.bf16.mxu1 %vm260_vm0, %v1737_v27 }
  0x36   :  { %1653 = vmatmul.mubr.msk.bf16.gmra.mrb[20].mxu0 %vm260_vm0, %v1722_v24 }
  0x37   :  { %1656 = vmatprep.mubr.msk.bf16.mxu0 %vm260_vm0, %v1723_v26 }
  0x38   :  { %1685 = vmatmul.mubr.msk.bf16.gmra.mrb[20].mxu1 %vm260_vm0, %v1738_v29 }
  0x39   :  { %1688 = vmatprep.mubr.msk.bf16.mxu1 %vm260_vm0, %v1739_v31 }
  0x3e   :  { %1657 = vmatmul.mubr.msk.bf16.gmra.mrb[24].mxu0 %vm260_vm0, %v1724_v28 }
  0x3f   :  { %1660 = vmatprep.mubr.msk.bf16.mxu0 %vm260_vm0, %v1725_v30 }
  0x40   :  { %1689 = vmatmul.mubr.msk.bf16.gmra.mrb[24].mxu1 %vm260_vm0, %v1740_v33 }
  0x41   :  { %1692 = vmatprep.mubr.msk.bf16.mxu1 %vm260_vm0, %v1741_v34 }
  0x46   :  { %1661 = vmatmul.mubr.msk.bf16.gmra.mrb[28].mxu0 %vm260_vm0, %v1726_v32 }
  0x48   :  { %1693 = vmatmul.mubr.msk.bf16.gmra.mrb[28].mxu1 %vm260_vm0, %v1742_v35 }
  0xe1   :  { %v1634_v36 = vpop.f32.mrb[0].mxu0  ;;  %v1952_v52 = vpop.f32.mrb[0].mxu1 }
  0xe2   :  { %v395_v37 = vpop.f32.mrb[1].mxu0  ;;  %v1041_v45 = vmul.f32 %v1634_v36, %v1634_v36  ;;  %v1954_v54 = vpop.f32.mrb[1].mxu1 }
  0xe3   :  { %v1635_v38 = vpop.f32.mrb[2].mxu0  ;;  %v1039_v41 = vmul.f32 %v395_v37, %v395_v37  ;;  %v1956_v59 = vpop.f32.mrb[2].mxu1 }
  0xe4   :  { %v1408_v39 = vpack.c.bf16 %v1635_v38, %v1634_v36  ;;  %v398_v40 = vpop.f32.mrb[3].mxu0  ;;  %v1042_v48 = vmul.f32 %v1635_v38, %v1635_v38  ;;  %v1488_v62 = vpack.c.bf16 %v1956_v59, %v1952_v52  ;;  %v1960_v63 = vpop.f32.mrb[3].mxu1 }
  0xe5   :  { %v1403_v42 = vpack.c.bf16 %v398_v40, %v395_v37  ;;  %v970_v43 = vadd.f32 %v398_v40, %v395_v37  ;;  %v1040_v44 = vmul.f32 %v398_v40, %v398_v40  ;;  %v1483_v4 = vpack.c.bf16 %v1960_v63, %v1954_v54 }
  0xe6   :  { %1560 = vst [vmem:[#allocation2 + $0x8] sm:$0xff] %v1408_v39   ;;  %1576 = vst [vmem:[#allocation2 + $0x88] sm:$0xff] %v1488_v62  }
  0xe7   :  { %1404 = vst [vmem:[#allocation2] sm:$0xff] %v1403_v42   ;;  %v971_v46 = vadd.f32 %v1634_v36, %v970_v43  ;;  %v1103_v47 = vadd.f32 %v1040_v44, %v1039_v41  ;;  %1575 = vst [vmem:[#allocation2 + $0x80] sm:$0xff] %v1483_v4  }
  0xe9   :  { %v1104_v49 = vadd.f32 %v1103_v47, %v1041_v45  ;;  %v1638_v50 = vpop.f32.mrb[4].mxu0  ;;  %v972_v51 = vadd.f32 %v1635_v38, %v971_v46  ;;  %v1964_v12 = vpop.f32.mrb[4].mxu1 }
  0xea   :  { %v411_v53 = vpop.f32.mrb[5].mxu0  ;;  %v1045_v5 = vmul.f32 %v1638_v50, %v1638_v50  ;;  %v1966_v14 = vpop.f32.mrb[5].mxu1 }
  0xeb   :  { %v973_v55 = vadd.f32 %v972_v51, %v411_v53  ;;  %v1043_v56 = vmul.f32 %v411_v53, %v411_v53  ;;  %v1105_v57 = vadd.f32 %v1104_v49, %v1042_v48  ;;  %v1639_v58 = vpop.f32.mrb[6].mxu0  ;;  %v1968_v19 = vpop.f32.mrb[6].mxu1 }
  0xec   :  { %v1418_v60 = vpack.c.bf16 %v1639_v58, %v1638_v50  ;;  %v414_v61 = vpop.f32.mrb[7].mxu0  ;;  %v1046_v8 = vmul.f32 %v1639_v58, %v1639_v58  ;;  %v1498_v22 = vpack.c.bf16 %v1968_v19, %v1964_v12  ;;  %v1972_v23 = vpop.f32.mrb[7].mxu1 }
  0xed   :  { %v1106_v0 = vadd.f32 %v1105_v57, %v1043_v56  ;;  %v1413_v1 = vpack.c.bf16 %v414_v61, %v411_v53  ;;  %v974_v2 = vadd.f32 %v973_v55, %v414_v61  ;;  %v1044_v3 = vmul.f32 %v414_v61, %v414_v61 }
  0xee   :  { %1562 = vst [vmem:[#allocation2 + $0x18] sm:$0xff] %v1418_v60   ;;  %1578 = vst [vmem:[#allocation2 + $0x98] sm:$0xff] %v1498_v22   ;;  %v1493_v28 = vpack.c.bf16 %v1972_v23, %v1966_v14 }
  0xef   :  { %1561 = vst [vmem:[#allocation2 + $0x10] sm:$0xff] %v1413_v1   ;;  %v975_v6 = vadd.f32 %v1638_v50, %v974_v2  ;;  %v1107_v7 = vadd.f32 %v1106_v0, %v1044_v3 }
  0xf0   :  { %1577 = vst [vmem:[#allocation2 + $0x90] sm:$0xff] %v1493_v28  }
  0xf1   :  { %v1108_v9 = vadd.f32 %v1107_v7, %v1045_v5  ;;  %v1642_v10 = vpop.f32.mrb[8].mxu0  ;;  %v976_v11 = vadd.f32 %v1639_v58, %v975_v6 }
  0xf2   :  { %v427_v13 = vpop.f32.mrb[9].mxu0  ;;  %v1049_v29 = vmul.f32 %v1642_v10, %v1642_v10 }
  0xf3   :  { %v977_v15 = vadd.f32 %v976_v11, %v427_v13  ;;  %v1047_v16 = vmul.f32 %v427_v13, %v427_v13  ;;  %v1109_v17 = vadd.f32 %v1108_v9, %v1046_v8  ;;  %v1643_v18 = vpop.f32.mrb[10].mxu0  ;;  %v1976_v36 = vpop.f32.mrb[8].mxu1 }
  0xf4   :  { %v1428_v20 = vpack.c.bf16 %v1643_v18, %v1642_v10  ;;  %v430_v21 = vpop.f32.mrb[11].mxu0  ;;  %v1050_v32 = vmul.f32 %v1643_v18, %v1643_v18  ;;  %v1978_v38 = vpop.f32.mrb[9].mxu1 }
  0xf5   :  { %v1110_v24 = vadd.f32 %v1109_v17, %v1047_v16  ;;  %v1423_v25 = vpack.c.bf16 %v430_v21, %v427_v13  ;;  %v978_v26 = vadd.f32 %v977_v15, %v430_v21  ;;  %v1048_v27 = vmul.f32 %v430_v21, %v430_v21  ;;  %v1980_v43 = vpop.f32.mrb[10].mxu1 }
  0xf6   :  { %1564 = vst [vmem:[#allocation2 + $0x28] sm:$0xff] %v1428_v20   ;;  %v1508_v46 = vpack.c.bf16 %v1980_v43, %v1976_v36  ;;  %v1984_v47 = vpop.f32.mrb[11].mxu1 }
  0xf7   :  { %1563 = vst [vmem:[#allocation2 + $0x20] sm:$0xff] %v1423_v25   ;;  %v979_v30 = vadd.f32 %v1642_v10, %v978_v26  ;;  %v1111_v31 = vadd.f32 %v1110_v24, %v1048_v27  ;;  %v1503_v53 = vpack.c.bf16 %v1984_v47, %v1978_v38 }
  0xf8   :  { %1580 = vst [vmem:[#allocation2 + $0xa8] sm:$0xff] %v1508_v46  }
  0xf9   :  { %v1112_v33 = vadd.f32 %v1111_v31, %v1049_v29  ;;  %v1646_v34 = vpop.f32.mrb[12].mxu0  ;;  %v980_v35 = vadd.f32 %v1643_v18, %v979_v30  ;;  %1579 = vst [vmem:[#allocation2 + $0xa0] sm:$0xff] %v1503_v53  }
  0xfa   :  { %v443_v37 = vpop.f32.mrb[13].mxu0  ;;  %v1053_v55 = vmul.f32 %v1646_v34, %v1646_v34 }
  0xfb   :  { %v981_v39 = vadd.f32 %v980_v35, %v443_v37  ;;  %v1051_v40 = vmul.f32 %v443_v37, %v443_v37  ;;  %v1113_v41 = vadd.f32 %v1112_v33, %v1050_v32  ;;  %v1647_v42 = vpop.f32.mrb[14].mxu0  ;;  %v1988_v0 = vpop.f32.mrb[12].mxu1 }
  0xfc   :  { %v1438_v44 = vpack.c.bf16 %v1647_v42, %v1646_v34  ;;  %v446_v45 = vpop.f32.mrb[15].mxu0  ;;  %v1054_v58 = vmul.f32 %v1647_v42, %v1647_v42  ;;  %v1990_v2 = vpop.f32.mrb[13].mxu1 }
  0xfd   :  { %v1114_v48 = vadd.f32 %v1113_v41, %v1051_v40  ;;  %v1433_v49 = vpack.c.bf16 %v446_v45, %v443_v37  ;;  %v982_v50 = vadd.f32 %v981_v39, %v446_v45  ;;  %v1052_v51 = vmul.f32 %v446_v45, %v446_v45  ;;  %v1992_v7 = vpop.f32.mrb[14].mxu1 }
  0xfe   :  { %1566 = vst [vmem:[#allocation2 + $0x38] sm:$0xff] %v1438_v44   ;;  %v1518_v10 = vpack.c.bf16 %v1992_v7, %v1988_v0  ;;  %v1996_v11 = vpop.f32.mrb[15].mxu1 }
  0xff   :  { %1565 = vst [vmem:[#allocation2 + $0x30] sm:$0xff] %v1433_v49   ;;  %v983_v56 = vadd.f32 %v1646_v34, %v982_v50  ;;  %v1115_v57 = vadd.f32 %v1114_v48, %v1052_v51  ;;  %v1513_v18 = vpack.c.bf16 %v1996_v11, %v1990_v2 }
 0x100   :  { %1582 = vst [vmem:[#allocation2 + $0xb8] sm:$0xff] %v1518_v10  }
 0x101   :  { %v1116_v60 = vadd.f32 %v1115_v57, %v1053_v55  ;;  %v1650_v61 = vpop.f32.mrb[16].mxu0  ;;  %v984_v62 = vadd.f32 %v1647_v42, %v983_v56  ;;  %1581 = vst [vmem:[#allocation2 + $0xb0] sm:$0xff] %v1513_v18  }
 0x102   :  { %v459_v1 = vpop.f32.mrb[17].mxu0  ;;  %v1057_v20 = vmul.f32 %v1650_v61, %v1650_v61 }
 0x103   :  { %v985_v3 = vadd.f32 %v984_v62, %v459_v1  ;;  %v1055_v4 = vmul.f32 %v459_v1, %v459_v1  ;;  %v1117_v5 = vadd.f32 %v1116_v60, %v1054_v58  ;;  %v1651_v6 = vpop.f32.mrb[18].mxu0  ;;  %v2000_v28 = vpop.f32.mrb[16].mxu1 }
 0x104   :  { %v1448_v8 = vpack.c.bf16 %v1651_v6, %v1650_v61  ;;  %v462_v9 = vpop.f32.mrb[19].mxu0  ;;  %v1058_v24 = vmul.f32 %v1651_v6, %v1651_v6  ;;  %v2002_v30 = vpop.f32.mrb[17].mxu1 }
 0x105   :  { %v1118_v13 = vadd.f32 %v1117_v5, %v1055_v4  ;;  %v1443_v15 = vpack.c.bf16 %v462_v9, %v459_v1  ;;  %v986_v16 = vadd.f32 %v985_v3, %v462_v9  ;;  %v1056_v17 = vmul.f32 %v462_v9, %v462_v9  ;;  %v2004_v35 = vpop.f32.mrb[18].mxu1 }
 0x106   :  { %1568 = vst [vmem:[#allocation2 + $0x48] sm:$0xff] %v1448_v8   ;;  %v1528_v40 = vpack.c.bf16 %v2004_v35, %v2000_v28  ;;  %v2008_v41 = vpop.f32.mrb[19].mxu1 }
 0x107   :  { %1567 = vst [vmem:[#allocation2 + $0x40] sm:$0xff] %v1443_v15   ;;  %v987_v21 = vadd.f32 %v1650_v61, %v986_v16  ;;  %v1119_v22 = vadd.f32 %v1118_v13, %v1056_v17  ;;  %v1523_v48 = vpack.c.bf16 %v2008_v41, %v2002_v30 }
 0x108   :  { %1584 = vst [vmem:[#allocation2 + $0xc8] sm:$0xff] %v1528_v40  }
 0x109   :  { %v1120_v25 = vadd.f32 %v1119_v22, %v1057_v20  ;;  %v1654_v26 = vpop.f32.mrb[20].mxu0  ;;  %v988_v27 = vadd.f32 %v1651_v6, %v987_v21  ;;  %1583 = vst [vmem:[#allocation2 + $0xc0] sm:$0xff] %v1523_v48  }
 0x10a   :  { %v475_v29 = vpop.f32.mrb[21].mxu0  ;;  %v1061_v49 = vmul.f32 %v1654_v26, %v1654_v26 }
 0x10b   :  { %v989_v31 = vadd.f32 %v988_v27, %v475_v29  ;;  %v1059_v32 = vmul.f32 %v475_v29, %v475_v29  ;;  %v1121_v33 = vadd.f32 %v1120_v25, %v1058_v24  ;;  %v1655_v34 = vpop.f32.mrb[22].mxu0  ;;  %v2012_v58 = vpop.f32.mrb[20].mxu1 }
 0x10c   :  { %v1458_v37 = vpack.c.bf16 %v1655_v34, %v1654_v26  ;;  %v478_v39 = vpop.f32.mrb[23].mxu0  ;;  %v1062_v53 = vmul.f32 %v1655_v34, %v1655_v34  ;;  %v2014_v61 = vpop.f32.mrb[21].mxu1 }
 0x10d   :  { %v1122_v42 = vadd.f32 %v1121_v33, %v1059_v32  ;;  %v1453_v44 = vpack.c.bf16 %v478_v39, %v475_v29  ;;  %v990_v45 = vadd.f32 %v989_v31, %v478_v39  ;;  %v1060_v46 = vmul.f32 %v478_v39, %v478_v39  ;;  %v2016_v5 = vpop.f32.mrb[22].mxu1 }
 0x10e   :  { %1570 = vst [vmem:[#allocation2 + $0x58] sm:$0xff] %v1458_v37   ;;  %v1538_v9 = vpack.c.bf16 %v2016_v5, %v2012_v58  ;;  %v2020_v10 = vpop.f32.mrb[23].mxu1 }
 0x10f   :  { %1569 = vst [vmem:[#allocation2 + $0x50] sm:$0xff] %v1453_v44   ;;  %v991_v50 = vadd.f32 %v1654_v26, %v990_v45  ;;  %v1123_v51 = vadd.f32 %v1122_v42, %v1060_v46  ;;  %v1533_v18 = vpack.c.bf16 %v2020_v10, %v2014_v61 }
 0x110   :  { %1586 = vst [vmem:[#allocation2 + $0xd8] sm:$0xff] %v1538_v9  }
 0x111   :  { %v1124_v55 = vadd.f32 %v1123_v51, %v1061_v49  ;;  %v1658_v56 = vpop.f32.mrb[24].mxu0  ;;  %v992_v57 = vadd.f32 %v1655_v34, %v991_v50  ;;  %1585 = vst [vmem:[#allocation2 + $0xd0] sm:$0xff] %v1533_v18  }
 0x112   :  { %v491_v60 = vpop.f32.mrb[25].mxu0  ;;  %v1065_v20 = vmul.f32 %v1658_v56, %v1658_v56 }
 0x113   :  { %v993_v62 = vadd.f32 %v992_v57, %v491_v60  ;;  %v1063_v1 = vmul.f32 %v491_v60, %v491_v60  ;;  %v1125_v3 = vadd.f32 %v1124_v55, %v1062_v53  ;;  %v1659_v4 = vpop.f32.mrb[26].mxu0  ;;  %v2024_v29 = vpop.f32.mrb[24].mxu1 }
 0x114   :  { %v1468_v6 = vpack.c.bf16 %v1659_v4, %v1658_v56  ;;  %v494_v8 = vpop.f32.mrb[27].mxu0  ;;  %v1066_v24 = vmul.f32 %v1659_v4, %v1659_v4  ;;  %v2026_v32 = vpop.f32.mrb[25].mxu1 }
 0x115   :  { %v1126_v13 = vadd.f32 %v1125_v3, %v1063_v1  ;;  %v1463_v15 = vpack.c.bf16 %v494_v8, %v491_v60  ;;  %v994_v16 = vadd.f32 %v993_v62, %v494_v8  ;;  %v1064_v17 = vmul.f32 %v494_v8, %v494_v8  ;;  %v2028_v40 = vpop.f32.mrb[26].mxu1 }
 0x116   :  { %1572 = vst [vmem:[#allocation2 + $0x68] sm:$0xff] %v1468_v6   ;;  %v1548_v45 = vpack.c.bf16 %v2028_v40, %v2024_v29  ;;  %v2032_v46 = vpop.f32.mrb[27].mxu1  ;;  %v1071_v3 = vmul.f32 %v1954_v54, %v1954_v54 }
 0x117   :  { %1571 = vst [vmem:[#allocation2 + $0x60] sm:$0xff] %v1463_v15   ;;  %v995_v21 = vadd.f32 %v1658_v56, %v994_v16  ;;  %v1127_v22 = vadd.f32 %v1126_v13, %v1064_v17  ;;  %v1543_v53 = vpack.c.bf16 %v2032_v46, %v2026_v32 }
 0x118   :  { %1588 = vst [vmem:[#allocation2 + $0xe8] sm:$0xff] %v1548_v45  }
 0x119   :  { %v1128_v25 = vadd.f32 %v1127_v22, %v1065_v20  ;;  %v1662_v26 = vpop.f32.mrb[28].mxu0  ;;  %v996_v27 = vadd.f32 %v1659_v4, %v995_v21  ;;  %1587 = vst [vmem:[#allocation2 + $0xe0] sm:$0xff] %v1543_v53   ;;  %v1072_v20 = vmul.f32 %v1960_v63, %v1960_v63 }
 0x11a   :  { %v507_v31 = vpop.f32.mrb[29].mxu0  ;;  %v1069_v55 = vmul.f32 %v1662_v26, %v1662_v26 }
 0x11b   :  { %v997_v33 = vadd.f32 %v996_v27, %v507_v31  ;;  %v1067_v34 = vmul.f32 %v507_v31, %v507_v31  ;;  %v1129_v37 = vadd.f32 %v1128_v25, %v1066_v24  ;;  %v1663_v39 = vpop.f32.mrb[30].mxu0  ;;  %v2038_v4 = vpop.f32.mrb[28].mxu1 }
 0x11c   :  { %v1478_v42 = vpack.c.bf16 %v1663_v39, %v1662_v26  ;;  %v510_v44 = vpop.f32.mrb[31].mxu0  ;;  %v1070_v60 = vmul.f32 %v1663_v39, %v1663_v39  ;;  %v2040_v6 = vpop.f32.mrb[29].mxu1 }
 0x11d   :  { %v1130_v48 = vadd.f32 %v1129_v37, %v1067_v34  ;;  %v1473_v49 = vpack.c.bf16 %v510_v44, %v507_v31  ;;  %v998_v50 = vadd.f32 %v997_v33, %v510_v44  ;;  %v1068_v51 = vmul.f32 %v510_v44, %v510_v44  ;;  %v2043_v13 = vpop.f32.mrb[30].mxu1 }
 0x11e   :  { %1574 = vst [vmem:[#allocation2 + $0x78] sm:$0xff] %v1478_v42   ;;  %v1558_v15 = vpack.c.bf16 %v2043_v13, %v2038_v4  ;;  %v2047_v16 = vpop.f32.mrb[31].mxu1 }
 0x11f   :  { %1573 = vst [vmem:[#allocation2 + $0x70] sm:$0xff] %v1473_v49   ;;  %v999_v56 = vadd.f32 %v1662_v26, %v998_v50  ;;  %v1131_v57 = vadd.f32 %v1130_v48, %v1068_v51  ;;  %v1553_v21 = vpack.c.bf16 %v2047_v16, %v2040_v6 }
 0x120   :  { %1590 = vst [vmem:[#allocation2 + $0xf8] sm:$0xff] %v1558_v15  }
 0x121   :  { %v1132_v62 = vadd.f32 %v1131_v57, %v1069_v55  ;;  %v1000_v1 = vadd.f32 %v1663_v39, %v999_v56  ;;  %1589 = vst [vmem:[#allocation2 + $0xf0] sm:$0xff] %v1553_v21  }
 0x123   :  { %v1001_v8 = vadd.f32 %v1000_v1, %v1954_v54  ;;  %v1133_v9 = vadd.f32 %v1132_v62, %v1070_v60  ;;  %v1073_v54 = vmul.f32 %v1952_v52, %v1952_v52 }
 0x125   :  { %v1134_v17 = vadd.f32 %v1133_v9, %v1071_v3  ;;  %v1002_v18 = vadd.f32 %v1001_v8, %v1960_v63 }
 0x127   :  { %v1003_v22 = vadd.f32 %v1952_v52, %v1002_v18  ;;  %v1135_v24 = vadd.f32 %v1134_v17, %v1072_v20 }
 0x128   :  { %1754 = shalt.err (!%p1751_p4)
}
 0x129   :  { %s1755_s29 = scalar_lea.hbm %s2170_s2, 4096 }
 0x12a   :  { %p1756_p5 = scmp.ne.s32.totalorder %s2170_s2, %s1755_s29  ;;  %p1759_p6 = scmp.lt.u32.totalorder %s1755_s29, %s2170_s2 }
 0x12c   :  { %p1761_p7 = pnand %p1759_p6, %p1756_p5 }
 0x12e   :  { %1764 = shalt.err (!%p1761_p7)
}
 0x12f   :  { %s1792_s7 = smov 64   ;;  %s1793_s8 = smov 4   ;;  %v1074_v52 = vmul.f32 %v1956_v59, %v1956_v59  ;;  %v1136_v63 = vadd.f32 %v1135_v24, %v1073_v54  ;;  %v1004_v25 = vadd.f32 %v1956_v59, %v1003_v22  ;;  %v1075_v26 = vmul.f32 %v1966_v14, %v1966_v14 }
 0x130   :  { %1186 = dma.vmem_to_hbm [thread:$0]  %s1181_s25, 4096, %s2170_s2, [#allocation3], %s1792_s7, %s1792_s7, %s1793_s8   ;;  %v1076_v37 = vmul.f32 %v1972_v23, %v1972_v23  ;;  %v1077_v39 = vmul.f32 %v1964_v12, %v1964_v12  ;;  %v1078_v59 = vmul.f32 %v1968_v19, %v1968_v19  ;;  %v1080_v53 = vmul.f32 %v1984_v47, %v1984_v47 }
 0x131   :  { %v1005_v27 = vadd.f32 %v1004_v25, %v1966_v14  ;;  %v1137_v31 = vadd.f32 %v1136_v63, %v1074_v52  ;;  %v1079_v14 = vmul.f32 %v1978_v38, %v1978_v38  ;;  %v1084_v8 = vmul.f32 %v1996_v11, %v1996_v11  ;;  %s1794_s2 = smov [#allocation4]  }
 0x132   :  { %v1088_v22 = vmul.f32 %v2008_v41, %v2008_v41  ;;  %s1193_s11 = sshll.u32 %s1794_s2, 4  ;;  %vm1172_vm2 = vcmask 1040384   ;;  %s1194_s11 = int_to_ptr.vmem [resolvable:$true] %s1193_s11 }
 0x133   :  { %v1138_v33 = vadd.f32 %v1137_v31, %v1075_v26  ;;  %v1006_v34 = vadd.f32 %v1005_v27, %v1972_v23  ;;  %s1765_s12 = scalar_lea.vmem %s1194_s11, 32  ;;  %p1770_p9 = scmp.lt.s32.totalorder %s1194_s11, %s1194_s11 }
 0x134   :  { %p1766_p8 = scmp.ne.s32.totalorder %s1194_s11, %s1765_s12  ;;  %p1771_p10 = scmp.lt.s32.totalorder %s1765_s12, %s1765_s12 }
 0x135   :  { %v1007_v42 = vadd.f32 %v1964_v12, %v1006_v34  ;;  %v1139_v44 = vadd.f32 %v1138_v33, %v1076_v37  ;;  %v1081_v12 = vmul.f32 %v1976_v36, %v1976_v36  ;;  %v1092_v33 = vmul.f32 %v2020_v10, %v2020_v10 }
 0x136   :  { %p1772_p11 = por %p1771_p10, %p1770_p9 }
 0x137   :  { %v1140_v45 = vadd.f32 %v1139_v44, %v1077_v39  ;;  %v1008_v48 = vadd.f32 %v1968_v19, %v1007_v42  ;;  %v1082_v19 = vmul.f32 %v1980_v43, %v1980_v43 }
 0x138   :  { %p1773_p12 = pnand %p1772_p11, %p1766_p8 }
 0x139   :  { %v1009_v49 = vadd.f32 %v1008_v48, %v1978_v38  ;;  %v1141_v50 = vadd.f32 %v1140_v45, %v1078_v59  ;;  %v1083_v38 = vmul.f32 %v1990_v2, %v1990_v2  ;;  %v1096_v48 = vmul.f32 %v2032_v46, %v2032_v46 }
 0x13b   :  { %v1142_v51 = vadd.f32 %v1141_v50, %v1079_v14  ;;  %v1010_v23 = vadd.f32 %v1009_v49, %v1984_v47 }
 0x13d   :  { %v1011_v55 = vadd.f32 %v1976_v36, %v1010_v23  ;;  %v1143_v56 = vadd.f32 %v1142_v51, %v1080_v53  ;;  %v1085_v36 = vmul.f32 %v1988_v0, %v1988_v0 }
 0x13f   :  { %v1144_v57 = vadd.f32 %v1143_v56, %v1081_v12  ;;  %v1012_v60 = vadd.f32 %v1980_v43, %v1011_v55  ;;  %v1086_v43 = vmul.f32 %v1992_v7, %v1992_v7  ;;  %v1100_v55 = vmul.f32 %v2047_v16, %v2047_v16 }
 0x141   :  { %v1013_v62 = vadd.f32 %v1012_v60, %v1990_v2  ;;  %v1145_v1 = vadd.f32 %v1144_v57, %v1082_v19  ;;  %v1087_v2 = vmul.f32 %v2002_v30, %v2002_v30 }
 0x143   :  { %v1146_v3 = vadd.f32 %v1145_v1, %v1083_v38  ;;  %v1014_v47 = vadd.f32 %v1013_v62, %v1996_v11 }
 0x145   :  { %v1015_v9 = vadd.f32 %v1988_v0, %v1014_v47  ;;  %v1147_v15 = vadd.f32 %v1146_v3, %v1084_v8  ;;  %v1089_v0 = vmul.f32 %v2000_v28, %v2000_v28 }
 0x147   :  { %v1148_v17 = vadd.f32 %v1147_v15, %v1085_v36  ;;  %v1016_v18 = vadd.f32 %v1992_v7, %v1015_v9  ;;  %v1090_v7 = vmul.f32 %v2004_v35, %v2004_v35 }
 0x149   :  { %v1017_v20 = vadd.f32 %v1016_v18, %v2002_v30  ;;  %v1149_v21 = vadd.f32 %v1148_v17, %v1086_v43  ;;  %v1091_v30 = vmul.f32 %v2014_v61, %v2014_v61 }
 0x14b   :  { %v1150_v54 = vadd.f32 %v1149_v21, %v1087_v2  ;;  %v1018_v11 = vadd.f32 %v1017_v20, %v2008_v41 }
 0x14d   :  { %v1019_v24 = vadd.f32 %v2000_v28, %v1018_v11  ;;  %v1151_v52 = vadd.f32 %v1150_v54, %v1088_v22  ;;  %v1093_v28 = vmul.f32 %v2012_v58, %v2012_v58 }
 0x14f   :  { %v1152_v63 = vadd.f32 %v1151_v52, %v1089_v0  ;;  %v1020_v25 = vadd.f32 %v2004_v35, %v1019_v24  ;;  %v1094_v35 = vmul.f32 %v2016_v5, %v2016_v5 }
 0x151   :  { %v1021_v26 = vadd.f32 %v1020_v25, %v2014_v61  ;;  %v1153_v27 = vadd.f32 %v1152_v63, %v1090_v7  ;;  %v1095_v61 = vmul.f32 %v2026_v32, %v2026_v32 }
 0x153   :  { %v1154_v31 = vadd.f32 %v1153_v27, %v1091_v30  ;;  %v1022_v41 = vadd.f32 %v1021_v26, %v2020_v10 }
 0x155   :  { %v1023_v34 = vadd.f32 %v2012_v58, %v1022_v41  ;;  %v1155_v37 = vadd.f32 %v1154_v31, %v1092_v33  ;;  %v1097_v58 = vmul.f32 %v2024_v29, %v2024_v29 }
 0x157   :  { %v1156_v39 = vadd.f32 %v1155_v37, %v1093_v28  ;;  %v1024_v42 = vadd.f32 %v2016_v5, %v1023_v34  ;;  %v1098_v5 = vmul.f32 %v2028_v40, %v2028_v40 }
 0x159   :  { %v1025_v44 = vadd.f32 %v1024_v42, %v2026_v32  ;;  %v1157_v59 = vadd.f32 %v1156_v39, %v1094_v35  ;;  %v1099_v32 = vmul.f32 %v2040_v6, %v2040_v6 }
 0x15b   :  { %v1158_v45 = vadd.f32 %v1157_v59, %v1095_v61  ;;  %v1026_v10 = vadd.f32 %v1025_v44, %v2032_v46 }
 0x15d   :  { %v1027_v14 = vadd.f32 %v2024_v29, %v1026_v10  ;;  %v1159_v49 = vadd.f32 %v1158_v45, %v1096_v48  ;;  %v1101_v29 = vmul.f32 %v2038_v4, %v2038_v4 }
 0x15f   :  { %v1160_v50 = vadd.f32 %v1159_v49, %v1097_v58  ;;  %v1028_v51 = vadd.f32 %v2028_v40, %v1027_v14  ;;  %v1102_v40 = vmul.f32 %v2043_v13, %v2043_v13 }
 0x161   :  { %v1029_v23 = vadd.f32 %v1028_v51, %v2040_v6  ;;  %v1161_v53 = vadd.f32 %v1160_v50, %v1098_v5 }
 0x163   :  { %v1162_v12 = vadd.f32 %v1161_v53, %v1099_v32  ;;  %v1030_v46 = vadd.f32 %v1029_v23, %v2047_v16 }
 0x165   :  { %v1031_v56 = vadd.f32 %v2038_v4, %v1030_v46  ;;  %v1163_v19 = vadd.f32 %v1162_v12, %v1100_v55 }
 0x167   :  { %v1032_v57 = vadd.f32 %v2043_v13, %v1031_v56  ;;  %v1164_v60 = vadd.f32 %v1163_v19, %v1101_v29 }
 0x169   :  { %v1033_v6 = vrot.slane %v1032_v57, 4  ;;  %v1165_v38 = vadd.f32 %v1164_v60, %v1102_v40 }
 0x16b   :  { %v1034_v62 = vadd.f32 %v1033_v6, %v1032_v57  ;;  %v1166_v1 = vrot.slane %v1165_v38, 4 }
 0x16d   :  { %v1035_v3 = vrot.slane %v1034_v62, 2  ;;  %v1167_v47 = vadd.f32 %v1166_v1, %v1165_v38 }
 0x16f   :  { %v1036_v8 = vadd.f32 %v1035_v3, %v1034_v62  ;;  %v1168_v16 = vrot.slane %v1167_v47, 2 }
 0x171   :  { %v1037_v36 = vrot.slane %v1036_v8, 1  ;;  %v1169_v9 = vadd.f32 %v1168_v16, %v1167_v47 }
 0x173   :  { %v1170_v15 = vrot.slane %v1169_v9, 1  ;;  %v1038_v4 = vadd.f32 %v1037_v36, %v1036_v8 }
 0x175   :  { %v1171_v43 = vadd.f32 %v1170_v15, %v1169_v9 }
 0x177   :  { %v1173_v17 = vsel %vm1172_vm2, %v1038_v4, %v1171_v43 }
 0x178   :  { %1174 = vst [vmem:[#allocation4] sm:$0x3] %v1173_v17 }
 0x179   :  { %1776 = shalt.err (!%p1773_p12)
}
 0x17a   :  { %s1777_s15 = scalar_lea.hbm %s2171_s3, 32 }
 0x17b   :  { %p1778_p13 = scmp.ne.s32.totalorder %s2171_s3, %s1777_s15  ;;  %p1781_p0 = scmp.lt.u32.totalorder %s1777_s15, %s2171_s3 }
 0x17d   :  { %p1783_p1 = pnand %p1781_p0, %p1778_p13 }
 0x17f   :  { %1786 = shalt.err (!%p1783_p1)
}
 0x180   :  { %1196 = dma.vmem_to_hbm [thread:$0]  %s1194_s11, 32, %s2171_s3, [#allocation5]  }
 0x181   :  { %1787 = dma.done.wait [#allocation3], 4096  }
 0x182   :  { %1788 = vsyncadd [#allocation3], 4294963200 }
 0x183   :  { %1789 = dma.done.wait [#allocation5], 32  }
 0x184   :  { %1790 = vsyncadd [#allocation5], 4294967264 }
 0x185   :  { %1203 = vsyncpa [#allocation3], 1 }
 0x186   :  { %1204 = vsyncpa [#allocation5], 1 }

</bundles_post_ra>
